<compile_context>
chip_gen: v7x
topology: tpu7x:2x2x1
jax: 0.10.0
libtpu: 0.0.40
codegen_flags: <defaults>
</compile_context>

<pallas_src>
import jax
import jax.numpy as jnp
from jax import lax
from jax.experimental import pallas as pl
from jax.experimental.pallas import tpu as pltpu


def _round_up(x, m):
    return (x + m - 1) // m * m


def _pick_tile(dim, max_tile, align):
    """Tile size (multiple of `align`) and padded dim.

    Splits the align-rounded dim evenly across blocks, so padding growth is
    bounded by ~(nblocks * align) instead of up to ~1 extra tile (fixes the
    clamp-then-re-round inflation, e.g. B=260 -> tm=136 / M=272, not M=512).
    """
    dim_a = _round_up(max(dim, 1), align)
    t = max(align, min(_round_up(max_tile, align), dim_a))
    nblk = -(-dim_a // t)                      # cdiv
    t = _round_up(-(-dim_a // nblk), align)    # even split, re-aligned
    return t, nblk * t


# ---------------------------------------------------------------------------
# Small-shape path: one whole-array call, no padding, no grid.
# ---------------------------------------------------------------------------
def _linear_small_kernel(x_ref, w_ref, b_ref, o_ref):
    """x_ref: (B, IN); w_ref: (OUT, IN) PyTorch layout; b_ref: (1, OUT)."""
    acc = lax.dot_general(
        x_ref[...], w_ref[...],
        dimension_numbers=(((1,), (1,)), ((), ())),   # contract IN with IN
        preferred_element_type=jnp.float32,
    )
    o_ref[...] = (acc + b_ref[...].astype(jnp.float32)).astype(o_ref.dtype)


# ---------------------------------------------------------------------------
# Tiled path: (M, N, K) grid, accumulate directly into the resident out block.
# ---------------------------------------------------------------------------
def _linear_tiled_kernel(x_ref, wt_ref, b_ref, o_ref):
    """x_ref: (tm, tk); wt_ref: (tk, tn) [pre-transposed weight]; b_ref: (1, tn)."""
    k = pl.program_id(2)

    @pl.when(k == 0)
    def _():
        # Output block is VMEM-resident across the K axis (its index ignores
        # k); init it with the broadcast bias so no epilogue add is needed.
        o_ref[...] = jnp.broadcast_to(b_ref[...].astype(jnp.float32), o_ref.shape)

    o_ref[...] += jnp.dot(x_ref[...], wt_ref[...],
                          preferred_element_type=jnp.float32)


def linear_pallas(x, weight, bias, *, tm=256, tn=256, tk=512, use_bf16=False):
    """y = x @ weight.T + bias.  x: (B, IN); weight: (OUT, IN); bias: (OUT,)."""
    B, IN = x.shape
    OUT = weight.shape[0]

    # --- Small-shape fast path: whole problem comfortably fits in VMEM. ----
    m8 = _round_up(B, 8)
    k128 = _round_up(IN, 128)
    n128 = _round_up(OUT, 128)
    footprint = (m8 * k128 + _round_up(OUT, 8) * k128 + m8 * n128) * 4
    if footprint <= (2 << 20):
        return pl.pallas_call(
            _linear_small_kernel,
            out_shape=jax.ShapeDtypeStruct((B, OUT), x.dtype),
        )(x, weight, bias.reshape(1, OUT))

    # --- Tiled path for larger problems. ------------------------------------
    tm, M = _pick_tile(B, tm, 8)
    tk, K = _pick_tile(IN, tk, 128)
    tn, N = _pick_tile(OUT, tn, 128)

    # Pad once (only when actually needed); weight is transposed once to
    # (K, N) so the in-kernel contraction is a plain row-major matmul.
    if (M, K) != (B, IN):
        x_p = jnp.zeros((M, K), x.dtype).at[:B, :IN].set(x)
    else:
        x_p = x
    w_t = weight.T                                  # (IN, OUT), one-time
    if (K, N) != (IN, OUT):
        wt_p = jnp.zeros((K, N), weight.dtype).at[:IN, :OUT].set(w_t)
    else:
        wt_p = w_t
    if N != OUT:
        b_p = jnp.zeros((1, N), jnp.float32).at[0, :OUT].set(bias.astype(jnp.float32))
    else:
        b_p = bias.astype(jnp.float32).reshape(1, N)

    if use_bf16:
        # MXU-native operands; accumulation stays f32 in o_ref.
        x_p = x_p.astype(jnp.bfloat16)
        wt_p = wt_p.astype(jnp.bfloat16)

    grid = (M // tm, N // tn, K // tk)

    out = pl.pallas_call(
        _linear_tiled_kernel,
        out_shape=jax.ShapeDtypeStruct((M, N), jnp.float32),
        grid=grid,
        in_specs=[
            pl.BlockSpec((tm, tk), lambda i, j, k: (i, k)),   # x tile
            pl.BlockSpec((tk, tn), lambda i, j, k: (k, j)),   # weight.T tile
            pl.BlockSpec((1, tn), lambda i, j, k: (0, j)),    # bias (per-j only)
        ],
        out_specs=pl.BlockSpec((tm, tn), lambda i, j, k: (i, j)),
        compiler_params=pltpu.CompilerParams(
            dimension_semantics=("parallel", "parallel", "arbitrary")),
    )(x_p, wt_p, b_p)

    if (M, N) != (B, OUT):
        out = out[:B, :OUT]
    return out.astype(x.dtype)


def model_forward(x, weight, bias):
    y = linear_pallas(x, weight, bias)   # (B, OUT)
    return y.reshape(-1)                 # torch.flatten(start_dim=0): pure metadata reshape


if __name__ == "__main__":
    key = jax.random.PRNGKey(0)
    kx, kw, kb = jax.random.split(key, 3)

    # Module: nn.Linear(2, 3); input x = torch.randn(2, 2)
    IN, OUT, B = 2, 3, 2
    x = jax.random.normal(kx, (B, IN), dtype=jnp.float32)

    # PyTorch-style uniform init: U(-1/sqrt(IN), 1/sqrt(IN))
    bound = 1.0 / (IN ** 0.5)
    weight = jax.random.uniform(kw, (OUT, IN), minval=-bound, maxval=bound,
                                dtype=jnp.float32)
    bias = jax.random.uniform(kb, (OUT,), minval=-bound, maxval=bound,
                              dtype=jnp.float32)

    out = jax.block_until_ready(model_forward(x, weight, bias))
    ref = (jnp.dot(x, weight.T, precision=lax.Precision.HIGHEST) + bias).reshape(-1)
    assert out.shape == (B * OUT,)
    assert jnp.allclose(out, ref, atol=1e-5, rtol=1e-5)

    # Secondary check: exercise the tiled multi-block path (including the
    # tile-clamp fix for an awkward batch size) at a modest size.
    B2, IN2, OUT2 = 260, 512, 384
    kx2, kw2, kb2 = jax.random.split(jax.random.PRNGKey(1), 3)
    x2 = jax.random.normal(kx2, (B2, IN2), dtype=jnp.float32)
    w2 = jax.random.normal(kw2, (OUT2, IN2), dtype=jnp.float32) * 0.05
    b2 = jax.random.normal(kb2, (OUT2,), dtype=jnp.float32)
    out2 = jax.block_until_ready(linear_pallas(x2, w2, b2))
    ref2 = jnp.dot(x2, w2.T, precision=lax.Precision.HIGHEST) + b2
    assert out2.shape == (B2, OUT2)
    assert jnp.allclose(out2, ref2, atol=1e-3, rtol=1e-3)

    print("KERNEL_OK")
</pallas_src>

<mosaic_0001>
module attributes {stable_mosaic.version = 11 : i64} {
  func.func @_linear_small_kernel(%arg0: memref<2x2xf32, #tpu.memory_space<vmem>>, %arg1: memref<3x2xf32, #tpu.memory_space<vmem>>, %arg2: memref<1x3xf32, #tpu.memory_space<vmem>>, %arg3: memref<2x3xf32, #tpu.memory_space<vmem>>) attributes {dimension_semantics = [], scalar_prefetch = 0 : i64, scratch_operands = 0 : i64, tpu.core_type = #tpu.core_type<tc>} {
    %c0 = arith.constant 0 : index
    %c0_0 = arith.constant 0 : index
    %0 = vector.load %arg0[%c0, %c0_0] : memref<2x2xf32, #tpu.memory_space<vmem>>, vector<2x2xf32>
    %c0_1 = arith.constant 0 : index
    %c0_2 = arith.constant 0 : index
    %1 = vector.load %arg1[%c0_1, %c0_2] : memref<3x2xf32, #tpu.memory_space<vmem>>, vector<3x2xf32>
    %cst = arith.constant dense<0.000000e+00> : vector<2x3xf32>
    %2 = tpu.matmul %0, %1, %cst {dimension_numbers = #tpu.dot_dimension_numbers<[1], [1], [0], [0], [0, 0, 1, 0], [], []>} : vector<2x2xf32>, vector<3x2xf32>, vector<2x3xf32> -> vector<2x3xf32>
    %c0_3 = arith.constant 0 : index
    %c0_4 = arith.constant 0 : index
    %3 = vector.load %arg2[%c0_3, %c0_4] : memref<1x3xf32, #tpu.memory_space<vmem>>, vector<1x3xf32>
    %4 = vector.broadcast %3 : vector<1x3xf32> to vector<2x3xf32>
    %5 = arith.addf %2, %4 : vector<2x3xf32>
    %c0_5 = arith.constant 0 : index
    %c0_6 = arith.constant 0 : index
    %6 = vector.load %arg3[%c0_5, %c0_6] : memref<2x3xf32, #tpu.memory_space<vmem>>, vector<2x3xf32>
    tpu.vector_store %arg3[%c0_5, %c0_6], %5 {strides = array<i32>} : memref<2x3xf32, #tpu.memory_space<vmem>>, vector<2x3xf32>,
    return
  }
}

</mosaic_0001>

<bundles_post_ra>
// kernel: tpu_custom_call.1
= control target key start
LH: loop header
LB: loop body
LE: loop exit
PB: predicated region body
PF: predicated region fallthrough
CT: control target
= control target key end

     0   :  { %vm24_vm0 = vcmask 15360   ;;  %v154_v1 = vmov 0.0   ;;  %vm155_vm1 = vmmov 0   ;;  %s198_s0 = inlined_call_operand.vmem [shape: f32[2,2], index: 0, kind: input, shape index: {}]   ;;  %s199_s1 = inlined_call_operand.vmem [shape: f32[3,2], index: 1, kind: input, shape index: {}]   ;;  %s200_s2 = inlined_call_operand.vmem [shape: f32[1,3], index: 2, kind: input, shape index: {}]   ;;  %s201_s3 = inlined_call_operand.hbm [shape: f32[2,3], index: 3, kind: output, shape index: {}]  }
   0x1   :  { %v16_v0 = vld [vmem:[%s199_s1] sm:$0x7]  ;;  %122 = vmatprep.subr.mxu0 %v154_v1  ;;  %124 = vmatprep.mubr.msk.f32.mxu0 %vm155_vm1, %v154_v1 }
   0x2   :  { %8 = vsyncpa [#allocation3], 0  ;;  %123 = vmatpush3.xpose.msk.msra.mxu0 %vm24_vm0, %v16_v0  ;;  %v15_v2 = vld [vmem:[%s198_s0] sm:$0x3]  ;;  %s156_s18 = smov [#allocation2]   ;;  %vm101_vm2 = vcmask 17408  }
   0x3   :  { %v117_v3 = vld [vmem:[%s200_s2] ss:$0 sm:$0xff]  ;;  %s109_s19 = sshll.u32 %s156_s18, 4  ;;  %s110_s19 = int_to_ptr.vmem [resolvable:$true] %s109_s19 }
   0x4   :  { %s130_s1 = scalar_lea.vmem %s110_s19, 32  ;;  %p135_p1 = scmp.lt.s32.totalorder %s110_s19, %s110_s19 }
   0x5   :  { %125 = vmatmul.mubr.msk.f32.vlgmr.msra.gmra.mrb[0].mxu0 %vm24_vm0, %v15_v2  ;;  %p131_p0 = scmp.ne.s32.totalorder %s110_s19, %s130_s1  ;;  %p136_p2 = scmp.lt.s32.totalorder %s130_s1, %s130_s1 }
   0x7   :  { %p137_p3 = por %p136_p2, %p135_p1 }
   0x9   :  { %p138_p4 = pnand %p137_p3, %p131_p0 }
  0xd8   :  { %v97_v4 = vpop.f32.mrb[0].mxu0 }
  0xd9   :  { %v98_v5 = vadd.f32 %v117_v3, %v97_v4  ;;  %v126_v6 = vpop.f32.mrb[1].mxu0 }
  0xdb   :  { %102 = vst.msk [vmem:[#allocation2] sm:$0x3] %vm101_vm2, %v98_v5 }
  0xdc   :  { %141 = shalt.err (!%p138_p4)
}
  0xdd   :  { %s142_s21 = scalar_lea.hbm %s201_s3, 32 }
  0xde   :  { %p143_p5 = scmp.ne.s32.totalorder %s201_s3, %s142_s21  ;;  %p146_p6 = scmp.lt.u32.totalorder %s142_s21, %s201_s3 }
  0xe0   :  { %p148_p7 = pnand %p146_p6, %p143_p5 }
  0xe2   :  { %151 = shalt.err (!%p148_p7)
}
  0xe3   :  { %112 = dma.vmem_to_hbm [thread:$0]  %s110_s19, 32, %s201_s3, [#allocation3]  }
  0xe4   :  { %152 = dma.done.wait [#allocation3], 32  }
  0xe5   :  { %153 = vsyncadd [#allocation3], 4294967264 }
  0xe6   :  { %116 = vsyncpa [#allocation3], 1 }

</bundles_post_ra>
